<compile_context>
chip_gen: v6e
topology: v6e:2x2x1
jax: 0.10.0
libtpu: 0.0.40
codegen_flags: <defaults>
</compile_context>

<pallas_src>
import jax
import jax.numpy as jnp
from jax.experimental import pallas as pl
from jax.experimental.pallas import tpu as pltpu

_LANES = 128


def _smpl_embed_kernel(idx_ref, betas_ref, frames_ref, out_ref):
    # idx_ref: scalar-prefetch SMEM ref -- consumed by the index_maps only.
    # betas_ref:  (1, 1, PAD) betas row 0 packed into lanes [0:d_betas), rest 0
    # frames_ref: (1, 1, PAD) gathered frame row packed into lanes [d_betas:total), rest 0
    # Lane-disjoint slabs => one VPU add assembles the full lane-dense output
    # row. No MXU pass, no iota/compare, no masked partial stores.
    out_ref[...] = betas_ref[...] + frames_ref[...]


def smpl_param_embedding(idx, betas, global_orient, body_pose, transl):
    """idx: (B,) int. Returns dict matching SMPLParamEmbedding.forward."""
    B = idx.shape[0]
    n_frames = global_orient.shape[0]
    d_betas = betas.shape[1]
    d_go = global_orient.shape[1]
    d_bp = body_pose.shape[1]
    d_tr = transl.shape[1]
    total = d_betas + d_go + d_bp + d_tr
    pad = pl.cdiv(total, _LANES) * _LANES

    # Clamp indices: nn.Embedding would error on OOB; avoid an OOB gather DMA.
    idx_i32 = jnp.clip(idx.astype(jnp.int32), 0, n_frames - 1)

    # Lane layout of the fused output row:
    #   [0:d_betas)        betas row 0 (broadcast over batch)
    #   [d_betas:+d_go)    global_orient[idx]
    #   [...:+d_bp)        body_pose[idx]
    #   [...:total)        transl[idx]
    betas_slab = jnp.zeros((1, 1, pad), jnp.float32)
    betas_slab = betas_slab.at[0, 0, :d_betas].set(betas[0].astype(jnp.float32))

    frames = jnp.concatenate(
        [global_orient.astype(jnp.float32),
         body_pose.astype(jnp.float32),
         transl.astype(jnp.float32)], axis=1)            # (n_frames, d_go+d_bp+d_tr)
    frames_slab = jnp.zeros((n_frames, 1, pad), jnp.float32)
    frames_slab = frames_slab.at[:, 0, d_betas:total].set(frames)

    bytes_accessed = (B + 1) * pad * 4 + B * pad * 4      # gathered rows + betas + output
    cost = pl.CostEstimate(flops=B * pad, transcendentals=0,
                           bytes_accessed=bytes_accessed)

    out = pl.pallas_call(
        _smpl_embed_kernel,
        out_shape=jax.ShapeDtypeStruct((B, 1, pad), jnp.float32),
        grid_spec=pltpu.PrefetchScalarGridSpec(
            num_scalar_prefetch=1,
            grid=(B,),
            in_specs=[
                # betas: same (row 0) block every step
                pl.BlockSpec((1, 1, pad), lambda i, idx_ref: (0, 0, 0)),
                # frames: data-dependent row gather via SMEM-prefetched idx
                pl.BlockSpec((1, 1, pad), lambda i, idx_ref: (idx_ref[i], 0, 0)),
            ],
            out_specs=pl.BlockSpec((1, 1, pad), lambda i, idx_ref: (i, 0, 0)),
        ),
        compiler_params=pltpu.CompilerParams(
            dimension_semantics=("parallel",)),
        cost_estimate=cost,
    )(idx_i32, betas_slab, frames_slab)

    out = out.reshape(B, pad)
    o0 = d_betas
    o1 = o0 + d_go
    o2 = o1 + d_bp
    return {
        "betas": out[:, :d_betas],
        "global_orient": out[:, o0:o1],
        "body_pose": out[:, o1:o2],
        "transl": out[:, o2:total],
    }


if __name__ == "__main__":
    key = jax.random.PRNGKey(0)
    k_b, k_g, k_p, k_t, k_i = jax.random.split(key, 5)

    n_frames = 16   # number of SMPL frames being optimized
    batch = 8       # frames queried in one forward call

    # deterministic synthetic "pretrained" embedding tables
    betas_table = jax.random.normal(k_b, (1, 10), dtype=jnp.float32)
    global_orient_table = jax.random.normal(k_g, (n_frames, 3), dtype=jnp.float32)
    body_pose_table = jax.random.normal(k_p, (n_frames, 69), dtype=jnp.float32)
    transl_table = jax.random.normal(k_t, (n_frames, 3), dtype=jnp.float32)

    idx = jax.random.randint(k_i, (batch,), 0, n_frames, dtype=jnp.int32)

    out = smpl_param_embedding(idx, betas_table, global_orient_table,
                               body_pose_table, transl_table)
    jax.block_until_ready(out)

    # reference check (plain JAX gather)
    ref = {
        "betas": betas_table[jnp.zeros_like(idx)],
        "global_orient": global_orient_table[idx],
        "body_pose": body_pose_table[idx],
        "transl": transl_table[idx],
    }
    for k in ("betas", "global_orient", "body_pose", "transl"):
        assert out[k].shape == ref[k].shape, (k, out[k].shape, ref[k].shape)
        assert jnp.allclose(out[k], ref[k], atol=1e-5), k

    print("KERNEL_OK")
</pallas_src>

<mosaic_0001>
module attributes {stable_mosaic.version = 11 : i64} {
  func.func @_smpl_embed_kernel(%arg0: i32, %arg1: memref<8xi32, #tpu.memory_space<smem>>, %arg2: memref<1x1x128xf32, #tpu.memory_space<vmem>>, %arg3: memref<1x1x128xf32, #tpu.memory_space<vmem>>, %arg4: memref<1x1x128xf32, #tpu.memory_space<vmem>>) attributes {dimension_semantics = [#tpu.dimension_semantics<parallel>], iteration_bounds = array<i64: 8>, scalar_prefetch = 1 : i64, scratch_operands = 0 : i64, tpu.core_type = #tpu.core_type<tc>, window_params = [{pipeline_mode = #tpu.pipeline_mode<synchronous>, transform_indices = @transform_0, window_bounds = array<i64: 1, 1, 128>}, {transform_indices = @transform_1, window_bounds = array<i64: 1, 1, 128>}, {transform_indices = @transform_2, window_bounds = array<i64: 1, 1, 128>}]} {
    %c0 = arith.constant 0 : index
    %c0_0 = arith.constant 0 : index
    %c0_1 = arith.constant 0 : index
    %0 = vector.load %arg2[%c0, %c0_0, %c0_1] : memref<1x1x128xf32, #tpu.memory_space<vmem>>, vector<1x1x128xf32>
    %c0_2 = arith.constant 0 : index
    %c0_3 = arith.constant 0 : index
    %c0_4 = arith.constant 0 : index
    %1 = vector.load %arg3[%c0_2, %c0_3, %c0_4] : memref<1x1x128xf32, #tpu.memory_space<vmem>>, vector<1x1x128xf32>
    %2 = arith.addf %0, %1 : vector<1x1x128xf32>
    %c0_5 = arith.constant 0 : index
    %c0_6 = arith.constant 0 : index
    %c0_7 = arith.constant 0 : index
    %3 = vector.load %arg4[%c0_5, %c0_6, %c0_7] : memref<1x1x128xf32, #tpu.memory_space<vmem>>, vector<1x1x128xf32>
    tpu.vector_store %arg4[%c0_5, %c0_6, %c0_7], %2 {strides = array<i32>} : memref<1x1x128xf32, #tpu.memory_space<vmem>>, vector<1x1x128xf32>,
    return
  }
  func.func @transform_0(%arg0: i32, %arg1: memref<8xi32, #tpu.memory_space<smem>>) -> (i32, i32, i32) {
    %c0_i32 = arith.constant 0 : i32
    %c0_i32_0 = arith.constant 0 : i32
    %c0_i32_1 = arith.constant 0 : i32
    %c0_i32_2 = arith.constant 0 : i32
    return %c0_i32, %c0_i32_0, %c0_i32_1 : i32, i32, i32
  }
  func.func @transform_1(%arg0: i32, %arg1: memref<8xi32, #tpu.memory_space<smem>>) -> (i32, i32, i32) {
    %0 = arith.index_cast %arg0 : i32 to index
    %1 = memref.load %arg1[%0] : memref<8xi32, #tpu.memory_space<smem>>
    %c0_i32 = arith.constant 0 : i32
    %c0_i32_0 = arith.constant 0 : i32
    %c0_i32_1 = arith.constant 0 : i32
    return %1, %c0_i32, %c0_i32_0 : i32, i32, i32
  }
  func.func @transform_2(%arg0: i32, %arg1: memref<8xi32, #tpu.memory_space<smem>>) -> (i32, i32, i32) {
    %c0_i32 = arith.constant 0 : i32
    %c0_i32_0 = arith.constant 0 : i32
    %c0_i32_1 = arith.constant 0 : i32
    return %arg0, %c0_i32, %c0_i32_0 : i32, i32, i32
  }
}

</mosaic_0001>

<bundles_post_ra>
// kernel: tpu_custom_call.1
= control target key start
LH: loop header
LB: loop body
LE: loop exit
PB: predicated region body
PF: predicated region fallthrough
CT: control target
= control target key end

     0   :  { %s455_s12 = smov [#allocation3]   ;;  %s650_s0 = inlined_call_operand.hbm [shape: s32[8], index: 0, kind: input, shape index: {}]   ;;  %s651_s1 = inlined_call_operand.vmem [shape: f32[1,1,128], index: 1, kind: input, shape index: {}]   ;;  %s652_s2 = inlined_call_operand.hbm [shape: f32[16,1,128], index: 2, kind: input, shape index: {}]   ;;  %s653_s3 = inlined_call_operand.hbm [shape: f32[8,1,128], index: 3, kind: output, shape index: {}]  }
   0x1   :  { %9 = dma.hbm_to_smem %s650_s0, 16, %s455_s12, [#allocation2] }
   0x2   :  { %417 = dma.done.wait [#allocation2], 16 }
   0x3   :  { %418 = vsyncadd [#allocation2], 4294967280 }
   0x4   :  { %11 = sfence }
   0x5   :  { %12 = vsyncpa [#allocation5], 0 }
   0x6   :  { %14 = vsyncpa [#allocation5 + $0x1], 0 }
   0x7   :  { %15 = vsyncpa [#allocation6], 0 }
   0x8   :  { %17 = vsyncpa [#allocation6 + $0x1], 0  ;;  %s481_s15 = smov 0   ;;  %s483_s16 = smov 0  }
   0x9   :  { %s485_s17 = smov 0   ;;  %s487_s18 = smov 0  }
   0xa   :  { %s489_s19 = smov 0   ;;  %s491_s20 = smov 0  }
   0xb   :  { %s493_s0 = smov 0  }
   0xc LB: > { %s515_s21 = sadd.s32 4294967295, %s453_s0   ;;  %s244_s22 = sadd.s32 4294967294, %s453_s0   ;;  %s453_s0 = sphi %s493_s0, %s674_s0   ;;  %s449_s20 = sphi %s491_s20, %s673_s20   ;;  %s445_s19 = sphi %s489_s19, %s672_s19   ;;  %s441_s18 = sphi %s487_s18, %s671_s18   ;;  %s437_s17 = sphi %s485_s17, %s670_s17   ;;  %s433_s16 = sphi %s483_s16, %s669_s16   ;;  %s429_s15 = sphi %s481_s15, %s668_s15  }
   0xd   : > { %s519_s23 = sadd.s32 1, %s453_s0   ;;  %s48_s24 = sld [smem:[#allocation3 + %s453_s0]] }
   0xe   : > { %s49_s25 = sld [smem:[#allocation3 + %s519_s23]]  ;;  %s53_s26 = sadd.s32 1, %s449_s20 }
   0xf   : > { %p60_p0 = scmp.ne.s32.totalorder %s449_s20, %s445_s19  ;;  %p61_p1 = scmp.eq.s32.totalorder %s453_s0, 0 }
  0x10   : > { %p66_p2 = scmp.ne.s32.totalorder %s445_s19, %s441_s18  ;;  %p67_p3 = scmp.eq.s32.totalorder %s515_s21, 0 }
  0x11   : > { %p529_p4 = por %p61_p1, %p60_p0  ;;  %s76_s28 = ssub.s32 %s453_s0, %s519_s23 }
  0x12   : > { %p535_p5 = por %p67_p3, %p66_p2  ;;  %p77_p6 = scmp.eq.s32.totalorder %s76_s28, 0 }
  0x13   : > { %s79_s30 = sadd.s32 1, %s437_s17  ;;  %p89_p7 = scmp.ne.s32.totalorder %s437_s17, %s433_s16 }
  0x14   : > { %s657_s29 = scalar_select %p535_p5, 1, 0 }
  0x15   : > { %s50_s4 = ssub.s32 %s48_s24, %s49_s25  ;;  %p90_p8 = scmp.eq.s32.totalorder %s515_s21, 7 }
  0x16   : > { %p51_p9 = scmp.eq.s32.totalorder %s50_s4, 0  ;;  %p95_p10 = scmp.ne.s32.totalorder %s433_s16, %s429_s15 }
  0x17   : > { %s546_s5 = scalar_select %p77_p6, %s437_s17, %s79_s30  }
  0x18   : > { %s549_s6 = scalar_select %p51_p9, %s449_s20, %s53_s26  }
  0x19   : > { %p551_p11 = por %p90_p8, %p89_p7  ;;  %p96_p12 = scmp.eq.s32.totalorder %s244_s22, 7 }
  0x1a   : > { %658 = sst [smem:[#allocation13_spill]] %s549_s6  ;;  %p268_p0 = scmp.lt.s32.totalorder %s453_s0, 8 }
  0x1b   : > { %s659_s7 = scalar_select %p551_p11, 1, 0 }
  0x1c   : > { %p555_p13 = por %p96_p12, %p95_p10  ;;  %s119_s9 = sand.u32 1, %s449_s20  }
  0x1d   : > { %s252_s10 = scalar_select %p529_p4, [#allocation3], [#allocation8] }
  0x1e   : > { %s660_s8 = scalar_select %p555_p13, 1, 0 }
  0x1f   : > { %s253_s11 = scalar_select %p529_p4, %s453_s0, 0 }
  0x20   : > { %s676_s10 = smov (!%p268_p0, %s252_s10), [#allocation9]  ;;  %p568_p1 = pnand %p268_p0, %p529_p4 }
  0x21   : > { %s678_s11 = smov (!%p268_p0, %s253_s11), 0  ;;  %p248_p2 = scmp.ge.s32.totalorder %s453_s0, 1 }
  0x22   : > { %s123_s13 = sld [smem:[%s676_s10 + %s678_s11]]  ;;  %s122_s14 = scalar_lea.vmem [#allocation4], %s119_s9 }
  0x23   : > { %s130_s18 = sshll.u32 %s122_s14, 4  ;;  %p135_p3 = scmp.lt.s32.totalorder %s453_s0, 9  ;;  %s578_s18 = int_to_ptr.vmem [resolvable:$true] %s130_s18 }
  0x24   : > { %s120_s28 = scalar_lea.sflag [#allocation5], %s119_s9  ;;  %p337_p7 = pneg %p568_p1 }
  0x25   : > { %p574_p6 = pnand %p248_p2, %p135_p3  ;;  %s340_s11 = scalar_lea.hbm %s652_s2, 256 }
  0x27   : > { %s662_s22 = scalar_select %p574_p6, 1, 0 }
  0x28   : > { %s247_s24 = sshll.u32 %s123_s13, 4 }
  0x29   : > { %s128_s27 = scalar_lea.hbm %s652_s2, %s247_s24 }
  0x2a   : > { %s335_s30 = scalar_lea.hbm %s128_s27, 16  ;;  %p341_p10 = scmp.lt.s32.totalorder %s128_s27, %s652_s2 }
  0x2b   : > { %p336_p4 = scmp.ne.s32.totalorder %s128_s27, %s335_s30  ;;  %p342_p12 = scmp.lt.s32.totalorder %s340_s11, %s335_s30 }
  0x2d   : > { %p338_p8 = pnand %p337_p7, %p336_p4  ;;  %p343_p0 = por %p342_p12, %p341_p10 }
  0x2f   : > { %p339_p9 = pneg %p338_p8 }
  0x31   : > { %p344_p2 = pnand %p343_p0, %p339_p9 }
  0x33   : > { %347 = shalt.err (!%p344_p2)
}
  0x34   : > { %s348_s9 = scalar_lea.vmem %s578_s18, 16  ;;  %s456_s13 = smov [#allocation4]  }
  0x35   : > { %p349_p3 = scmp.ne.s32.totalorder %s578_s18, %s348_s9  ;;  %s353_s24 = sshll.u32 %s456_s13, 4  ;;  %s354_s24 = int_to_ptr.vmem [resolvable:$false] %s353_s24 }
  0x36   : > { %s355_s25 = scalar_lea.vmem %s354_s24, 32  ;;  %p356_p8 = scmp.lt.s32.totalorder %s578_s18, %s354_s24 }
  0x37   : > { %p351_p13 = pnand %p349_p3, %p337_p7  ;;  %p357_p11 = scmp.lt.s32.totalorder %s355_s25, %s348_s9 }
  0x39   : > { %p352_p4 = pneg %p351_p13  ;;  %p358_p5 = por %p357_p11, %p356_p8 }
  0x3b   : > { %p359_p6 = pnand %p358_p5, %p352_p4 }
  0x3d   : > { %362 = shalt.err (!%p359_p6)
}
  0x3e   : > { %263 = dma.hbm_to_vmem [thread:$0]  (!%p568_p1), %s128_s27, 16, %s578_s18, %s120_s28  }
  0x3f   : > { %p663_p9 = scmp.ne.s32.totalorder %s662_s22, 0 }
  0x40   : > { %s141_s6 = sand.u32 (!%p663_p9), 1, %s445_s19   ;;  %p664_p13 = scmp.ne.s32.totalorder (!%p663_p9), %s657_s29, 0 }
  0x41   : > { %139 = sbr.rel (%p663_p9) target bundleno = 96 (0x60), region = 28  ;;  %s142_s26 = scalar_lea.sflag (!%p663_p9), [#allocation5], %s141_s6 }
  0x42   : > { %s144_s30 = scalar_lea.vmem (!%p663_p9), [#allocation4], %s141_s6 }
  0x46   : > { %420 = dma.done.wait (%p664_p13), %s142_s26, 16  }
  0x47   : > { %422 = vsyncadd (%p664_p13), %s142_s26, 4294967280  ;;  %s161_s4 = sand.u32 1, %s433_s16   ;;  %s249_s18 = sshll.u32 %s515_s21, 4  ;;  %v164_v0 = vld [vmem:[%s651_s1] sm:$0x1] }
  0x48   : > { %s162_s12 = scalar_lea.vmem [#allocation7], %s161_s4  ;;  %v165_v1 = vld [vmem:[%s144_s30] sm:$0x1]  ;;  %s179_s14 = scalar_lea.hbm %s653_s3, %s249_s18 }
  0x49   : > { %s181_s10 = sshll.u32 %s162_s12, 4  ;;  %v166_v2 = vadd.f32 %v165_v1, %v164_v0  ;;  %s169_s29 = scalar_lea.sflag [#allocation6], %s161_s4  ;;  %s182_s10 = int_to_ptr.vmem [resolvable:$true] %s181_s10 }
  0x4a   : > { %s363_s9 = scalar_lea.vmem %s182_s10, 16  ;;  %p665_p11 = scmp.ne.s32.totalorder %s659_s7, 0 }
  0x4b   : > { %167 = vst [vmem:[%s162_s12] sm:$0x1] %v166_v2  ;;  %p364_p5 = scmp.ne.s32.totalorder %s182_s10, %s363_s9  ;;  %s457_s13 = smov [#allocation7]  }
  0x4c   : > { %s367_s21 = sshll.u32 %s457_s13, 4  ;;  %s368_s21 = int_to_ptr.vmem [resolvable:$false] %s367_s21 }
  0x4d   : > { %p365_p1 = pnand %p364_p5, %p665_p11  ;;  %s369_s24 = scalar_lea.vmem %s368_s21, 32 }
  0x4e   : > { %p370_p7 = scmp.lt.s32.totalorder %s182_s10, %s368_s21  ;;  %p371_p10 = scmp.lt.s32.totalorder %s369_s24, %s363_s9 }
  0x4f   : > { %p366_p6 = pneg %p365_p1 }
  0x50   : > { %p372_p12 = por %p371_p10, %p370_p7 }
  0x52   : > { %p373_p0 = pnand %p372_p12, %p366_p6 }
  0x54   : > { %376 = shalt.err (!%p373_p0)
}
  0x55   : > { %s377_s25 = scalar_lea.hbm %s179_s14, 16  ;;  %s381_s30 = scalar_lea.hbm %s653_s3, 128 }
  0x56   : > { %p378_p2 = scmp.ne.s32.totalorder %s179_s14, %s377_s25  ;;  %p382_p8 = scmp.lt.s32.totalorder %s179_s14, %s653_s3 }
  0x57   : > { %p383_p9 = scmp.lt.s32.totalorder %s381_s30, %s377_s25 }
  0x58   : > { %p379_p3 = pnand %p378_p2, %p665_p11 }
  0x59   : > { %p384_p13 = por %p383_p9, %p382_p8 }
  0x5a   : > { %p380_p4 = pneg %p379_p3 }
  0x5c   : > { %p385_p5 = pnand %p384_p13, %p380_p4 }
  0x5e   : > { %388 = shalt.err (!%p385_p5)
}
  0x5f   : > { %256 = dma.vmem_to_hbm [thread:$0]  (%p665_p11), %s182_s10, 16, %s179_s14, %s169_s29  }
  0x60 PF: > { %p269_p1 = scmp.ge.s32.totalorder %s453_s0, 2  ;;  %s193_s18 = sand.u32 1, %s429_s15  }
  0x61   : > { %p666_p6 = scmp.ne.s32.totalorder %s660_s8, 0  ;;  %s194_s27 = scalar_lea.sflag [#allocation6], %s193_s18 }
  0x63   : > { %p265_p7 = pnand %p269_p1, %p666_p6 }
  0x65   : > { %p266_p10 = pneg %p265_p7 }
  0x67   : > { %424 = dma.done.wait (%p266_p10), %s194_s27, 16  }
  0x68   : > { %426 = vsyncadd (%p266_p10), %s194_s27, 4294967280  ;;  %s667_s7 = sld [smem:[#allocation13_spill]]  ;;  %p20_p11 = scmp.ge.s32.totalorder %s519_s23, 10  }
  0x69   : > { %s668_s15 = smov %s433_s16  ;;  %s669_s16 = smov %s437_s17 }
  0x6a   : > { %s670_s17 = smov %s546_s5  ;;  %s671_s18 = smov %s445_s19 }
  0x6b   : > { %s672_s19 = smov %s449_s20  ;;  %s674_s0 = smov %s519_s23 }
  0x6c   :  { %22 = sbr.rel (!%p20_p11) target bundleno = 12 (0xc), region = 73 }
  0x6e   : > { %s673_s20 = smov %s667_s7 }
  0x71   :  { %198 = vsyncpa [#allocation5], 1 }
  0x72   :  { %200 = vsyncpa [#allocation5 + $0x1], 1 }
  0x73   :  { %201 = vsyncpa [#allocation6], 1 }
  0x74   :  { %203 = vsyncpa [#allocation6 + $0x1], 1 }

</bundles_post_ra>
